<compile_context>
chip_gen: v7x
topology: tpu7x:2x2x1
jax: 0.10.0
libtpu: 0.0.40
codegen_flags: <defaults>
</compile_context>

<pallas_src>
import math
import functools

import jax
import jax.numpy as jnp
from jax.experimental import pallas as pl
from jax.experimental.pallas import tpu as pltpu


def _round_up(x, m):
    return ((x + m - 1) // m) * m


def _const_block_spec(shape, index_map):
    """BlockSpec for a grid-constant operand, single-buffered when supported."""
    try:
        return pl.BlockSpec(shape, index_map, pipeline_mode=pl.Buffered(1))
    except (TypeError, ValueError, AttributeError, NotImplementedError):
        # Older JAX without pipeline_mode / Buffered(1): fall back to default
        # double buffering (constant index_map means no re-DMA either way).
        return pl.BlockSpec(shape, index_map)


def _attention_kernel(q_ref, h_ref, w_ref, b_ref, mask_ref, *out_refs,
                      ratio, mask_needed, need_weights):
    """One grid step == one block of batches.

    q_ref    : (Bblk, Lq_pad, E_pad)  query block, caller dtype
    h_ref    : (Bblk, Lk_pad, E_pad)  history block (K = V source), caller dtype
    w_ref    : (4, E_pad, E_pad)      bf16 stacked [Wq.T*scale, Wk.T, Wv.T, Wo.T]
    b_ref    : (4, E_pad)             f32 stacked  [bq*scale, bk, bv, bo]
    mask_ref : (1, Lk_pad)            f32 additive key-padding mask {0, -1e30}
    """
    bblk, lq_pad, e_pad = q_ref.shape
    _, lk_pad, _ = h_ref.shape

    # Fold batch into the matmul M dimension for the projections.
    q2 = q_ref[...].reshape(bblk * lq_pad, e_pad)            # caller dtype
    h2 = h_ref[...].reshape(bblk * lk_pad, e_pad)
    q2_bf = q2.astype(jnp.bfloat16)
    h2_bf = h2.astype(jnp.bfloat16)

    bs = b_ref[...]                                          # f32
    bq, bk, bv, bo = bs[0:1], bs[1:2], bs[2:3], bs[3:4]      # (1, E_pad) each

    # Input projections: bf16 MXU operands, f32 accumulation.
    qp = jnp.dot(q2_bf, w_ref[0], preferred_element_type=jnp.float32) + bq
    kp = jnp.dot(h2_bf, w_ref[1], preferred_element_type=jnp.float32) + bk
    vp = jnp.dot(h2_bf, w_ref[2], preferred_element_type=jnp.float32) + bv

    qp3 = qp.reshape(bblk, lq_pad, e_pad).astype(jnp.bfloat16)
    kp3 = kp.reshape(bblk, lk_pad, e_pad).astype(jnp.bfloat16)
    vp3 = vp.reshape(bblk, lk_pad, e_pad).astype(jnp.bfloat16)

    # Scaled dot-product attention (single head, head_dim == E); scale already
    # folded into the query projection.
    scores = jnp.einsum("bqe,bke->bqk", qp3, kp3,
                        preferred_element_type=jnp.float32)   # (Bblk, Lq, Lk_pad)
    if mask_needed:
        # Additive mask applied to the f32-accumulated scores.
        scores = scores + mask_ref[...].reshape(1, 1, lk_pad)

    m = jnp.max(scores, axis=-1, keepdims=True)
    ex = jnp.exp(scores - m)
    # approx reciprocal (EUP slot); weight rows sum to 1 within ~2^-12.
    w = ex * pl.reciprocal(jnp.sum(ex, axis=-1, keepdims=True), approx=True)

    attn = jnp.einsum("bqk,bke->bqe", w.astype(jnp.bfloat16), vp3,
                      preferred_element_type=jnp.float32)     # (Bblk, Lq, E)

    # Output projection + residual blend with the raw (full precision) query.
    attn2 = attn.reshape(bblk * lq_pad, e_pad).astype(jnp.bfloat16)
    out2 = jnp.dot(attn2, w_ref[3], preferred_element_type=jnp.float32) + bo
    adjusted = ratio * q2.astype(jnp.float32) + (1.0 - ratio) * out2

    out_refs[0][...] = adjusted.reshape(bblk, lq_pad, e_pad).astype(out_refs[0].dtype)
    if need_weights:
        out_refs[1][...] = w.astype(out_refs[1].dtype)


def pallas_attention(history_vectors, query_vector, params,
                     attention_weight_ratio=0.1, need_weights=True):
    """Mirrors Attention.forward.  If history_vectors is None, attention is
    skipped and the blend reduces to the identity (matches the PyTorch path)."""
    if history_vectors is None:
        # TODO(synk): matches PyTorch semantics — attention skipped, weights=None.
        return query_vector, None

    B, Lq, E = query_vector.shape
    _, Lk, _ = history_vectors.shape
    out_dtype = query_vector.dtype

    # Lane-dense padding: E and Lk up to the 128-lane grain, Lq to 8 sublanes.
    E_pad = _round_up(E, 128)
    Lq_pad = _round_up(Lq, 8)
    Lk_pad = _round_up(Lk, 128)

    q_item = jnp.dtype(query_vector.dtype).itemsize
    h_item = jnp.dtype(history_vectors.dtype).itemsize
    o_item = jnp.dtype(out_dtype).itemsize

    # Constant single-buffered operands: bf16 weights, f32 biases + key mask.
    const_bytes = 4 * E_pad * E_pad * 2 + 4 * E_pad * 4 + Lk_pad * 4

    def block_bytes(bb):
        q_b = 2 * bb * Lq_pad * E_pad * q_item                       # 2x buffered
        h_b = 2 * bb * Lk_pad * E_pad * h_item
        o_b = 2 * bb * Lq_pad * E_pad * o_item
        w_b = (2 * bb * Lq_pad * Lk_pad * o_item) if need_weights else 0
        # In-kernel intermediates (f32 + bf16 copies), rough upper bound.
        interm = bb * (2 * Lq_pad * E_pad * 6        # qp, attn (f32 + bf16)
                       + 2 * Lk_pad * E_pad * 6      # kp, vp  (f32 + bf16)
                       + 3 * Lq_pad * Lk_pad * 4)    # scores, exp, softmax w
        return q_b + h_b + o_b + w_b + interm

    # VMEM-aware batch folding: target M = b_blk*Lq_pad ~ 256 for the
    # projections, capped by a byte budget that also fits v7x's 64 MiB VMEM.
    VMEM_BUDGET = 40 << 20
    b_blk = min(B, max(1, 256 // Lq_pad))
    while b_blk > 1 and const_bytes + block_bytes(b_blk) > VMEM_BUDGET:
        b_blk = max(1, b_blk // 2)
    # Keep the grid >= 2 steps when possible so both v7x TensorCores get work.
    if B >= 2:
        b_blk = min(b_blk, pl.cdiv(B, 2))

    B_pad = _round_up(B, b_blk)
    n_steps = B_pad // b_blk

    def maybe_pad3(x, d0, d1, d2):
        pads = ((0, d0 - x.shape[0]), (0, d1 - x.shape[1]), (0, d2 - x.shape[2]))
        if all(p[1] == 0 for p in pads):
            return x                      # already aligned: no extra HBM copy
        return jnp.pad(x, pads)

    # Inputs stay in their original dtype (no wrapper-side upcast).
    q_p = maybe_pad3(query_vector, B_pad, Lq_pad, E_pad)
    h_p = maybe_pad3(history_vectors, B_pad, Lk_pad, E_pad)

    scale = 1.0 / math.sqrt(E)  # true embed dim, not padded

    def padw(w):
        return jnp.pad(w, ((0, E_pad - E), (0, E_pad - E)))

    def padb(b):
        return jnp.pad(jnp.asarray(b, jnp.float32).reshape(-1), (0, E_pad - E))

    # One-time XLA transpose outside the kernel; softmax scale folded into the
    # query projection (weight AND bias).  Weights feed the MXU as bf16.
    ws = jnp.stack([padw((params["wq"] * scale).T),
                    padw(params["wk"].T),
                    padw(params["wv"].T),
                    padw(params["wo"].T)]).astype(jnp.bfloat16)     # (4, E_pad, E_pad)
    bs = jnp.stack([padb(params["bq"] * scale),
                    padb(params["bk"]),
                    padb(params["bv"]),
                    padb(params["bo"])]).astype(jnp.float32)        # (4, E_pad)

    mask_needed = Lk_pad > Lk
    key_mask = jnp.where(jnp.arange(Lk_pad) < Lk, 0.0, -1e30)
    key_mask = key_mask.astype(jnp.float32).reshape(1, Lk_pad)      # (1, Lk_pad)

    kernel = functools.partial(
        _attention_kernel,
        ratio=float(attention_weight_ratio),
        mask_needed=mask_needed,
        need_weights=need_weights,
    )

    in_specs = [
        pl.BlockSpec((b_blk, Lq_pad, E_pad), lambda g: (g, 0, 0)),   # query block
        pl.BlockSpec((b_blk, Lk_pad, E_pad), lambda g: (g, 0, 0)),   # history block
        _const_block_spec((4, E_pad, E_pad), lambda g: (0, 0, 0)),   # packed weights
        _const_block_spec((4, E_pad), lambda g: (0, 0)),             # packed biases
        _const_block_spec((1, Lk_pad), lambda g: (0, 0)),            # key-padding mask
    ]

    out_shape = [jax.ShapeDtypeStruct((B_pad, Lq_pad, E_pad), out_dtype)]
    out_specs = [pl.BlockSpec((b_blk, Lq_pad, E_pad), lambda g: (g, 0, 0))]
    if need_weights:
        # Attention weights written back in the caller's dtype (halves HBM
        # writeback for bf16 callers vs. always-f32).
        out_shape.append(jax.ShapeDtypeStruct((B_pad, Lq_pad, Lk_pad), out_dtype))
        out_specs.append(pl.BlockSpec((b_blk, Lq_pad, Lk_pad), lambda g: (g, 0, 0)))

    vmem_needed = const_bytes + block_bytes(b_blk)
    vmem_limit = min(64 << 20, max(16 << 20, int(vmem_needed * 3 // 2) + (2 << 20)))

    results = pl.pallas_call(
        kernel,
        out_shape=tuple(out_shape),
        grid_spec=pltpu.PrefetchScalarGridSpec(
            num_scalar_prefetch=0,
            grid=(n_steps,),
            in_specs=in_specs,
            out_specs=tuple(out_specs),
        ),
        compiler_params=pltpu.CompilerParams(
            dimension_semantics=("parallel",),
            vmem_limit_bytes=vmem_limit,
        ),
    )(q_p, h_p, ws, bs, key_mask)

    def crop(x, d0, d1, d2):
        if x.shape == (d0, d1, d2):
            return x
        return x[:d0, :d1, :d2]

    if need_weights:
        adjusted_p, w_p = results
        return crop(adjusted_p, B, Lq, E), crop(w_p, B, Lq, Lk)

    adjusted_p = results[0] if isinstance(results, (list, tuple)) else results
    return crop(adjusted_p, B, Lq, E), None


def init_params(key, hidden_dim):
    """Deterministic synthetic parameters matching nn.MultiheadAttention(E, 1) shapes."""
    ks = jax.random.split(key, 5)
    s = 1.0 / math.sqrt(hidden_dim)
    wq = jax.random.uniform(ks[0], (hidden_dim, hidden_dim), jnp.float32, -s, s)
    wk = jax.random.uniform(ks[1], (hidden_dim, hidden_dim), jnp.float32, -s, s)
    wv = jax.random.uniform(ks[2], (hidden_dim, hidden_dim), jnp.float32, -s, s)
    wo = jax.random.uniform(ks[3], (hidden_dim, hidden_dim), jnp.float32, -s, s)
    bq = jnp.zeros((1, hidden_dim), jnp.float32)
    bk = jnp.zeros((1, hidden_dim), jnp.float32)
    bv = jnp.zeros((1, hidden_dim), jnp.float32)
    bo = jax.random.uniform(ks[4], (1, hidden_dim), jnp.float32, -s, s)
    return dict(wq=wq, wk=wk, wv=wv, bq=bq, bk=bk, bv=bv, wo=wo, bo=bo)


def _reference(history, query, params, ratio=0.1):
    """Pure-JAX f32 reference (same math as torch MHA with a single head)."""
    E = query.shape[-1]
    qp = query @ params["wq"].T + params["bq"]
    kp = history @ params["wk"].T + params["bk"]
    vp = history @ params["wv"].T + params["bv"]
    scores = jnp.einsum("bqe,bke->bqk", qp, kp) / math.sqrt(E)
    w = jax.nn.softmax(scores, axis=-1)
    attn = jnp.einsum("bqk,bke->bqe", w, vp)
    out = attn @ params["wo"].T + params["bo"]
    return ratio * query + (1.0 - ratio) * out, w


if __name__ == "__main__":
    B, Lq, Lk, E = 2, 8, 8, 32

    key = jax.random.PRNGKey(0)
    k_hist, k_query, k_params = jax.random.split(key, 3)

    history_vectors = jax.random.normal(k_hist, (B, Lk, E), jnp.float32)
    query_vector = jax.random.normal(k_query, (B, Lq, E), jnp.float32)
    params = init_params(k_params, E)

    adjusted, attn_weights = pallas_attention(
        history_vectors, query_vector, params, attention_weight_ratio=0.1
    )
    adjusted = jax.block_until_ready(adjusted)
    attn_weights = jax.block_until_ready(attn_weights)

    ref_out, ref_w = _reference(history_vectors, query_vector, params, 0.1)
    # bf16 MXU operands + approx softmax reciprocal -> looser tolerance vs f32 ref.
    assert adjusted.shape == (B, Lq, E) and attn_weights.shape == (B, Lq, Lk)
    assert jnp.allclose(adjusted, ref_out, atol=2e-2, rtol=2e-2)
    assert jnp.allclose(attn_weights, ref_w, atol=2e-2, rtol=2e-2)

    print("KERNEL_OK")
</pallas_src>

<mosaic_0001>
module attributes {stable_mosaic.version = 11 : i64} {
  func.func @_attention_kernel(%arg0: i32, %arg1: memref<1x8x128xf32, #tpu.memory_space<vmem>>, %arg2: memref<1x128x128xf32, #tpu.memory_space<vmem>>, %arg3: memref<4x128x128xbf16, #tpu.memory_space<vmem>>, %arg4: memref<4x128xf32, #tpu.memory_space<vmem>>, %arg5: memref<1x128xf32, #tpu.memory_space<vmem>>, %arg6: memref<1x8x128xf32, #tpu.memory_space<vmem>>, %arg7: memref<1x8x128xf32, #tpu.memory_space<vmem>>) attributes {dimension_semantics = [#tpu.dimension_semantics<parallel>], iteration_bounds = array<i64: 2>, scalar_prefetch = 0 : i64, scratch_operands = 0 : i64, tpu.core_type = #tpu.core_type<tc>, window_params = [{transform_indices = @transform_0, window_bounds = array<i64: 1, 8, 128>}, {transform_indices = @transform_1, window_bounds = array<i64: 1, 128, 128>}, {pipeline_mode = #tpu.pipeline_mode<synchronous>, transform_indices = @transform_2, window_bounds = array<i64: 4, 128, 128>}, {pipeline_mode = #tpu.pipeline_mode<synchronous>, transform_indices = @transform_3, window_bounds = array<i64: 4, 128>}, {pipeline_mode = #tpu.pipeline_mode<synchronous>, transform_indices = @transform_4, window_bounds = array<i64: 1, 128>}, {transform_indices = @transform_5, window_bounds = array<i64: 1, 8, 128>}, {transform_indices = @transform_6, window_bounds = array<i64: 1, 8, 128>}]} {
    %c0 = arith.constant 0 : index
    %c0_0 = arith.constant 0 : index
    %c0_1 = arith.constant 0 : index
    %0 = vector.load %arg1[%c0, %c0_0, %c0_1] : memref<1x8x128xf32, #tpu.memory_space<vmem>>, vector<1x8x128xf32>
    %1 = vector.shape_cast %0 : vector<1x8x128xf32> to vector<8x128xf32>
    %c0_2 = arith.constant 0 : index
    %c0_3 = arith.constant 0 : index
    %c0_4 = arith.constant 0 : index
    %2 = vector.load %arg2[%c0_2, %c0_3, %c0_4] : memref<1x128x128xf32, #tpu.memory_space<vmem>>, vector<1x128x128xf32>
    %3 = vector.shape_cast %2 : vector<1x128x128xf32> to vector<128x128xf32>
    %4 = arith.truncf %1 : vector<8x128xf32> to vector<8x128xbf16>
    %5 = arith.truncf %3 : vector<128x128xf32> to vector<128x128xbf16>
    %c0_5 = arith.constant 0 : index
    %c0_6 = arith.constant 0 : index
    %6 = vector.load %arg4[%c0_5, %c0_6] : memref<4x128xf32, #tpu.memory_space<vmem>>, vector<4x128xf32>
    %7 = vector.extract_strided_slice %6 {offsets = [0, 0], sizes = [1, 128], strides = [1, 1]} : vector<4x128xf32> to vector<1x128xf32>
    %8 = vector.extract_strided_slice %6 {offsets = [1, 0], sizes = [1, 128], strides = [1, 1]} : vector<4x128xf32> to vector<1x128xf32>
    %9 = vector.extract_strided_slice %6 {offsets = [2, 0], sizes = [1, 128], strides = [1, 1]} : vector<4x128xf32> to vector<1x128xf32>
    %10 = vector.extract_strided_slice %6 {offsets = [3, 0], sizes = [1, 128], strides = [1, 1]} : vector<4x128xf32> to vector<1x128xf32>
    %c0_7 = arith.constant 0 : index
    %c0_8 = arith.constant 0 : index
    %c0_9 = arith.constant 0 : index
    %11 = vector.load %arg3[%c0_7, %c0_8, %c0_9] : memref<4x128x128xbf16, #tpu.memory_space<vmem>>, vector<1x128x128xbf16>
    %12 = vector.shape_cast %11 : vector<1x128x128xbf16> to vector<128x128xbf16>
    %cst = arith.constant dense<0.000000e+00> : vector<8x128xf32>
    %13 = tpu.matmul %4, %12, %cst {dimension_numbers = #tpu.dot_dimension_numbers<[1], [0], [0], [1], [0, 0, 1, 1], [], []>} : vector<8x128xbf16>, vector<128x128xbf16>, vector<8x128xf32> -> vector<8x128xf32>
    %14 = vector.broadcast %7 : vector<1x128xf32> to vector<8x128xf32>
    %15 = arith.addf %13, %14 : vector<8x128xf32>
    %c1 = arith.constant 1 : index
    %c0_10 = arith.constant 0 : index
    %c0_11 = arith.constant 0 : index
    %16 = vector.load %arg3[%c1, %c0_10, %c0_11] : memref<4x128x128xbf16, #tpu.memory_space<vmem>>, vector<1x128x128xbf16>
    %17 = vector.shape_cast %16 : vector<1x128x128xbf16> to vector<128x128xbf16>
    %cst_12 = arith.constant dense<0.000000e+00> : vector<128x128xf32>
    %18 = tpu.matmul %5, %17, %cst_12 {dimension_numbers = #tpu.dot_dimension_numbers<[1], [0], [0], [1], [0, 0, 1, 1], [], []>} : vector<128x128xbf16>, vector<128x128xbf16>, vector<128x128xf32> -> vector<128x128xf32>
    %19 = vector.broadcast %8 : vector<1x128xf32> to vector<128x128xf32>
    %20 = arith.addf %18, %19 : vector<128x128xf32>
    %c2 = arith.constant 2 : index
    %c0_13 = arith.constant 0 : index
    %c0_14 = arith.constant 0 : index
    %21 = vector.load %arg3[%c2, %c0_13, %c0_14] : memref<4x128x128xbf16, #tpu.memory_space<vmem>>, vector<1x128x128xbf16>
    %22 = vector.shape_cast %21 : vector<1x128x128xbf16> to vector<128x128xbf16>
    %cst_15 = arith.constant dense<0.000000e+00> : vector<128x128xf32>
    %23 = tpu.matmul %5, %22, %cst_15 {dimension_numbers = #tpu.dot_dimension_numbers<[1], [0], [0], [1], [0, 0, 1, 1], [], []>} : vector<128x128xbf16>, vector<128x128xbf16>, vector<128x128xf32> -> vector<128x128xf32>
    %24 = vector.broadcast %9 : vector<1x128xf32> to vector<128x128xf32>
    %25 = arith.addf %23, %24 : vector<128x128xf32>
    %26 = vector.shape_cast %15 : vector<8x128xf32> to vector<1x8x128xf32>
    %27 = arith.truncf %26 : vector<1x8x128xf32> to vector<1x8x128xbf16>
    %28 = vector.shape_cast %20 : vector<128x128xf32> to vector<1x128x128xf32>
    %29 = arith.truncf %28 : vector<1x128x128xf32> to vector<1x128x128xbf16>
    %30 = vector.shape_cast %25 : vector<128x128xf32> to vector<1x128x128xf32>
    %31 = arith.truncf %30 : vector<1x128x128xf32> to vector<1x128x128xbf16>
    "tpu.trace_start"() <{level = 10 : i32, message = "bqe,bke->bqk"}> : () -> ()
    %cst_16 = arith.constant dense<0.000000e+00> : vector<1x8x128xf32>
    %32 = tpu.matmul %27, %29, %cst_16 {dimension_numbers = #tpu.dot_dimension_numbers<[2], [2], [1], [1], [0, 0, 0, 1, 1, 1], [0], [0]>} : vector<1x8x128xbf16>, vector<1x128x128xbf16>, vector<1x8x128xf32> -> vector<1x8x128xf32>
    "tpu.trace_stop"() : () -> ()
    %c0_17 = arith.constant 0 : index
    %c0_18 = arith.constant 0 : index
    %33 = vector.load %arg5[%c0_17, %c0_18] : memref<1x128xf32, #tpu.memory_space<vmem>>, vector<1x128xf32>
    %34 = vector.shape_cast %33 : vector<1x128xf32> to vector<1x1x128xf32>
    %35 = vector.broadcast %34 : vector<1x1x128xf32> to vector<1x8x128xf32>
    %36 = arith.addf %32, %35 : vector<1x8x128xf32>
    %cst_19 = arith.constant dense<0xFF800000> : vector<1x8xf32>
    %37 = vector.multi_reduction <maximumf>, %36, %cst_19 [2] : vector<1x8x128xf32> to vector<1x8xf32>
    %38 = vector.shape_cast %37 : vector<1x8xf32> to vector<1x8x1xf32>
    %39 = vector.broadcast %38 : vector<1x8x1xf32> to vector<1x8x128xf32>
    %40 = arith.subf %36, %39 : vector<1x8x128xf32>
    %41 = math.exp %40 : vector<1x8x128xf32>
    %cst_20 = arith.constant dense<0.000000e+00> : vector<1x8xf32>
    %42 = vector.multi_reduction <add>, %41, %cst_20 [2] : vector<1x8x128xf32> to vector<1x8xf32>
    %43 = vector.shape_cast %42 : vector<1x8xf32> to vector<1x8x1xf32>
    %44 = tpu.reciprocal %43 {approx = true} : vector<1x8x1xf32> -> vector<1x8x1xf32>
    %45 = vector.broadcast %44 : vector<1x8x1xf32> to vector<1x8x128xf32>
    %46 = arith.mulf %41, %45 : vector<1x8x128xf32>
    %47 = arith.truncf %46 : vector<1x8x128xf32> to vector<1x8x128xbf16>
    "tpu.trace_start"() <{level = 10 : i32, message = "bqk,bke->bqe"}> : () -> ()
    %cst_21 = arith.constant dense<0.000000e+00> : vector<1x8x128xf32>
    %48 = tpu.matmul %47, %31, %cst_21 {dimension_numbers = #tpu.dot_dimension_numbers<[2], [1], [1], [2], [0, 0, 0, 1, 1, 2], [0], [0]>} : vector<1x8x128xbf16>, vector<1x128x128xbf16>, vector<1x8x128xf32> -> vector<1x8x128xf32>
    "tpu.trace_stop"() : () -> ()
    %49 = vector.shape_cast %48 : vector<1x8x128xf32> to vector<8x128xf32>
    %50 = arith.truncf %49 : vector<8x128xf32> to vector<8x128xbf16>
    %c3 = arith.constant 3 : index
    %c0_22 = arith.constant 0 : index
    %c0_23 = arith.constant 0 : index
    %51 = vector.load %arg3[%c3, %c0_22, %c0_23] : memref<4x128x128xbf16, #tpu.memory_space<vmem>>, vector<1x128x128xbf16>
    %52 = vector.shape_cast %51 : vector<1x128x128xbf16> to vector<128x128xbf16>
    %cst_24 = arith.constant dense<0.000000e+00> : vector<8x128xf32>
    %53 = tpu.matmul %50, %52, %cst_24 {dimension_numbers = #tpu.dot_dimension_numbers<[1], [0], [0], [1], [0, 0, 1, 1], [], []>} : vector<8x128xbf16>, vector<128x128xbf16>, vector<8x128xf32> -> vector<8x128xf32>
    %54 = vector.broadcast %10 : vector<1x128xf32> to vector<8x128xf32>
    %55 = arith.addf %53, %54 : vector<8x128xf32>
    %cst_25 = arith.constant 1.000000e-01 : f32
    %56 = vector.broadcast %cst_25 : f32 to vector<8x128xf32>
    %57 = arith.mulf %56, %1 : vector<8x128xf32>
    %cst_26 = arith.constant 0.899999976 : f32
    %58 = vector.broadcast %cst_26 : f32 to vector<8x128xf32>
    %59 = arith.mulf %58, %55 : vector<8x128xf32>
    %60 = arith.addf %57, %59 : vector<8x128xf32>
    %61 = vector.shape_cast %60 : vector<8x128xf32> to vector<1x8x128xf32>
    %c0_27 = arith.constant 0 : index
    %c0_28 = arith.constant 0 : index
    %c0_29 = arith.constant 0 : index
    %62 = vector.load %arg6[%c0_27, %c0_28, %c0_29] : memref<1x8x128xf32, #tpu.memory_space<vmem>>, vector<1x8x128xf32>
    tpu.vector_store %arg6[%c0_27, %c0_28, %c0_29], %61 {strides = array<i32>} : memref<1x8x128xf32, #tpu.memory_space<vmem>>, vector<1x8x128xf32>,
    %c0_30 = arith.constant 0 : index
    %c0_31 = arith.constant 0 : index
    %c0_32 = arith.constant 0 : index
    %63 = vector.load %arg7[%c0_30, %c0_31, %c0_32] : memref<1x8x128xf32, #tpu.memory_space<vmem>>, vector<1x8x128xf32>
    tpu.vector_store %arg7[%c0_30, %c0_31, %c0_32], %46 {strides = array<i32>} : memref<1x8x128xf32, #tpu.memory_space<vmem>>, vector<1x8x128xf32>,
    return
  }
  func.func @transform_0(%arg0: i32) -> (i32, i32, i32) {
    %c0_i32 = arith.constant 0 : i32
    %c0_i32_0 = arith.constant 0 : i32
    %c0_i32_1 = arith.constant 0 : i32
    return %arg0, %c0_i32, %c0_i32_0 : i32, i32, i32
  }
  func.func @transform_1(%arg0: i32) -> (i32, i32, i32) {
    %c0_i32 = arith.constant 0 : i32
    %c0_i32_0 = arith.constant 0 : i32
    %c0_i32_1 = arith.constant 0 : i32
    return %arg0, %c0_i32, %c0_i32_0 : i32, i32, i32
  }
  func.func @transform_2(%arg0: i32) -> (i32, i32, i32) {
    %c0_i32 = arith.constant 0 : i32
    %c0_i32_0 = arith.constant 0 : i32
    %c0_i32_1 = arith.constant 0 : i32
    %c0_i32_2 = arith.constant 0 : i32
    return %c0_i32, %c0_i32_0, %c0_i32_1 : i32, i32, i32
  }
  func.func @transform_3(%arg0: i32) -> (i32, i32) {
    %c0_i32 = arith.constant 0 : i32
    %c0_i32_0 = arith.constant 0 : i32
    %c0_i32_1 = arith.constant 0 : i32
    return %c0_i32, %c0_i32_0 : i32, i32
  }
  func.func @transform_4(%arg0: i32) -> (i32, i32) {
    %c0_i32 = arith.constant 0 : i32
    %c0_i32_0 = arith.constant 0 : i32
    %c0_i32_1 = arith.constant 0 : i32
    return %c0_i32, %c0_i32_0 : i32, i32
  }
  func.func @transform_5(%arg0: i32) -> (i32, i32, i32) {
    %c0_i32 = arith.constant 0 : i32
    %c0_i32_0 = arith.constant 0 : i32
    %c0_i32_1 = arith.constant 0 : i32
    return %arg0, %c0_i32, %c0_i32_0 : i32, i32, i32
  }
  func.func @transform_6(%arg0: i32) -> (i32, i32, i32) {
    %c0_i32 = arith.constant 0 : i32
    %c0_i32_0 = arith.constant 0 : i32
    %c0_i32_1 = arith.constant 0 : i32
    return %arg0, %c0_i32, %c0_i32_0 : i32, i32, i32
  }
}

</mosaic_0001>

<bundles_post_ra>
// kernel: tpu_custom_call.1
= control target key start
LH: loop header
LB: loop body
LE: loop exit
PB: predicated region body
PF: predicated region fallthrough
CT: control target
= control target key end

     0   :  { %s2208_s0 = inlined_call_operand.hbm [shape: f32[2,8,128], index: 0, kind: input, shape index: {}]   ;;  %s2209_s1 = inlined_call_operand.hbm [shape: f32[2,128,128], index: 1, kind: input, shape index: {}]   ;;  %s2210_s2 = inlined_call_operand.hbm [shape: bf16[4,128,128], index: 2, kind: input, shape index: {}]   ;;  %s2211_s3 = inlined_call_operand.vmem [shape: f32[4,128], index: 3, kind: input, shape index: {}]   ;;  %s2212_s4 = inlined_call_operand.vmem [shape: f32[1,128], index: 4, kind: input, shape index: {}]   ;;  %s2213_s5 = inlined_call_operand.hbm [shape: f32[2,8,128], index: 5, kind: output, shape index: {0}]   ;;  %s2214_s6 = inlined_call_operand.hbm [shape: f32[2,8,128], index: 6, kind: output, shape index: {1}]  }
   0x1   :  { %2218 = sst [smem:[#allocation16_spill]] %s2208_s0 }
   0x2   :  { %2219 = sst [smem:[#allocation17_spill]] %s2210_s2 }
   0x3   :  { %12 = vsyncpa [#allocation3], 0 }
   0x4   :  { %14 = vsyncpa [#allocation3 + $0x1], 0 }
   0x5   :  { %15 = vsyncpa [#allocation6], 0 }
   0x6   :  { %17 = vsyncpa [#allocation6 + $0x1], 0 }
   0x7   :  { %18 = vsyncpa [#allocation4], 0 }
   0x8   :  { %20 = vsyncpa [#allocation4 + $0x1], 0 }
   0x9   :  { %21 = vsyncpa [#allocation10], 0 }
   0xa   :  { %23 = vsyncpa [#allocation10 + $0x1], 0  ;;  %s1813_s21 = smov 0   ;;  %s1815_s22 = smov 0  }
   0xb   :  { %s1817_s23 = smov 0   ;;  %s1819_s24 = smov 0  }
   0xc LB: > { %s1834_s25 = sadd.s32 4294967295, %s1765_s24   ;;  %s1195_s26 = sadd.s32 4294967294, %s1765_s24   ;;  %s1765_s24 = sphi %s1819_s24, %s2238_s24   ;;  %s1761_s23 = sphi %s1817_s23, %s2237_s23   ;;  %s1757_s22 = sphi %s1815_s22, %s2236_s22   ;;  %s1753_s21 = sphi %s1813_s21, %s2235_s21  }
   0xd   : > { %p49_p0 = scmp.ne.s32.totalorder %s1757_s22, %s1753_s21  ;;  %p2215_p1 = scmp.eq.s32.totalorder %s1834_s25, 0 }
   0xe   : > { %p168_p3 = scmp.eq.s32.totalorder %s1195_s26, 1  ;;  %p1196_p5 = scmp.ge.s32.totalorder %s1765_s24, 1 }
   0xf   : > { %p1843_p4 = por %p2215_p1, %p49_p0  ;;  %p201_p7 = scmp.lt.s32.totalorder %s1765_s24, 3 }
  0x10   : > { %p1848_p6 = por %p168_p3, %p49_p0  ;;  %s1767_s30 = smov [#allocation7]  }
  0x11   : > { %s2220_s27 = scalar_select %p1843_p4, 1, 0 }
  0x12   : > { %s2221_s28 = scalar_select %p1848_p6, 1, 0 }
  0x13   : > { %p1853_p8 = pnand %p1196_p5, %p201_p7  ;;  %s213_s7 = sshll.u32 %s1767_s30, 4  ;;  %s1857_s7 = int_to_ptr.vmem [resolvable:$true] %s213_s7 }
  0x14   : > { %s1869_s9 = sadd.s32 1, %s1765_s24   ;;  %s36_s10 = sadd.s32 1, %s1761_s23 }
  0x15   : > { %s2222_s29 = scalar_select %p1853_p8, 1, 0 }
  0x16   : > { %p1474_p9 = pneg %p1853_p8  ;;  %s33_s11 = ssub.s32 %s1765_s24, %s1869_s9 }
  0x17   : > { %s2224_s2 = sld [smem:[#allocation17_spill]] }
  0x18   : > { %p1864_p11 = pnand %p1474_p9, %p2215_p1 }
  0x1a   : > { %p1573_p13 = pneg %p1864_p11 }
  0x1d   : > { %s1571_s14 = scalar_lea.hbm %s2224_s2, 4096 }
  0x1e   : > { %p1572_p12 = scmp.ne.s32.totalorder %s2224_s2, %s1571_s14  ;;  %p1578_p5 = scmp.lt.u32.totalorder %s1571_s14, %s2224_s2 }
  0x20   : > { %p1574_p0 = pnand %p1573_p13, %p1572_p12 }
  0x22   : > { %p1575_p3 = pneg %p1574_p0 }
  0x24   : > { %p1580_p7 = pnand %p1578_p5, %p1575_p3 }
  0x26   : > { %1583 = shalt.err (!%p1580_p7)
}
  0x27   : > { %s1584_s19 = scalar_lea.vmem %s1857_s7, 4096  ;;  %p1592_p2 = scmp.lt.s32.totalorder %s1857_s7, %s1857_s7 }
  0x28   : > { %p1585_p9 = scmp.ne.s32.totalorder %s1857_s7, %s1584_s19  ;;  %p1593_p6 = scmp.lt.s32.totalorder %s1584_s19, %s1584_s19 }
  0x2a   : > { %p1587_p10 = pnand %p1585_p9, %p1573_p13  ;;  %p1594_p4 = por %p1593_p6, %p1592_p2 }
  0x2c   : > { %p1588_p1 = pneg %p1587_p10 }
  0x2e   : > { %p1595_p8 = pnand %p1594_p4, %p1588_p1 }
  0x30   : > { %1598 = shalt.err (!%p1595_p8)
}
  0x31   : > { %s1768_s20 = smov 64   ;;  %s1769_s26 = smov 4  }
  0x32   : > { %1477 = dma.hbm_to_vmem [thread:$0]  (!%p1864_p11), %s2224_s2, 4096, %s1857_s7, [#allocation6], %s1768_s20, %s1768_s20, %s1769_s26  }
  0x33   : > { %p34_p2 = scmp.eq.s32.totalorder %s33_s11, 0  ;;  %p43_p1 = scmp.ne.s32.totalorder %s1761_s23, %s1757_s22 }
  0x34   : > { %p44_p4 = scmp.eq.s32.totalorder %s1765_s24, 0  ;;  %p1493_p6 = scmp.lt.s32.totalorder %s1765_s24, 2 }
  0x35   : > { %s1900_s13 = scalar_select %p34_p2, %s1761_s23, %s36_s10  }
  0x36   : > { %p45_p8 = por %p44_p4, %p43_p1  ;;  %p2225_p10 = scmp.eq.s32.totalorder %s1834_s25, 1 }
  0x37   : > { %s1909_s15 = sand.u32 1, %s1761_s23   ;;  %s1200_s8 = sshll.u32 %s1765_s24, 7 }
  0x38   : > { %p1904_p12 = por %p2225_p10, %p43_p1  ;;  %s1199_s16 = sshll.u32 %s1909_s15, 3 }
  0x39   : > { %s2227_s0 = sld [smem:[#allocation16_spill]]  ;;  %s237_s10 = scalar_lea.vmem [#allocation2], %s1199_s16 }
  0x3a   : > { %s244_s18 = sshll.u32 %s237_s10, 4  ;;  %p1918_p11 = pnand %p1493_p6, %p45_p8  ;;  %s1922_s18 = int_to_ptr.vmem [resolvable:$true] %s244_s18 }
  0x3b   : > { %s1201_s20 = sshll.u32 %s1909_s15, 7  ;;  %s234_s26 = scalar_lea.sflag [#allocation3], %s1909_s15 }
  0x3c   : > { %p1601_p0 = pneg %p1918_p11 }
  0x3f   : > { %s1916_s17 = scalar_lea.hbm %s2227_s0, %s1200_s8  ;;  %s1604_s16 = scalar_lea.hbm %s2227_s0, 256 }
  0x40   : > { %s1599_s30 = scalar_lea.hbm %s1916_s17, 128  ;;  %p1605_p7 = scmp.lt.u32.totalorder %s1916_s17, %s2227_s0 }
  0x41   : > { %p1600_p13 = scmp.ne.s32.totalorder %s1916_s17, %s1599_s30  ;;  %p1606_p9 = scmp.lt.u32.totalorder %s1604_s16, %s1599_s30 }
  0x42   : > { %p1608_p1 = scmp.lt.u32.totalorder %s1599_s30, %s1916_s17 }
  0x43   : > { %p1602_p3 = pnand %p1601_p0, %p1600_p13  ;;  %p1607_p2 = por %p1606_p9, %p1605_p7 }
  0x45   : > { %p1603_p5 = pneg %p1602_p3  ;;  %p1609_p4 = por %p1608_p1, %p1607_p2 }
  0x47   : > { %p1610_p6 = pnand %p1609_p4, %p1603_p5 }
  0x49   : > { %1613 = shalt.err (!%p1610_p6)
}
  0x4a   : > { %s1614_s10 = scalar_lea.vmem %s1922_s18, 128  ;;  %s1770_s12 = smov [#allocation2]  }
  0x4b   : > { %p1615_p8 = scmp.ne.s32.totalorder %s1922_s18, %s1614_s10  ;;  %s1619_s8 = sshll.u32 %s1770_s12, 4  ;;  %s1620_s8 = int_to_ptr.vmem [resolvable:$false] %s1619_s8 }
  0x4c   : > { %s1621_s7 = scalar_lea.vmem %s1620_s8, 256  ;;  %p1622_p3 = scmp.lt.s32.totalorder %s1922_s18, %s1620_s8 }
  0x4d   : > { %p1617_p10 = pnand %p1615_p8, %p1601_p0  ;;  %p1623_p7 = scmp.lt.s32.totalorder %s1621_s7, %s1614_s10 }
  0x4f   : > { %p1618_p13 = pneg %p1617_p10  ;;  %p1624_p9 = por %p1623_p7, %p1622_p3 }
  0x51   : > { %p1625_p2 = pnand %p1624_p9, %p1618_p13 }
  0x53   : > { %1628 = shalt.err (!%p1625_p2)
}
  0x54   : > { %1481 = dma.hbm_to_vmem [thread:$0]  (!%p1918_p11), %s1916_s17, 128, %s1922_s18, %s234_s26  }
  0x55   : > { %s255_s30 = scalar_lea.vmem [#allocation5], %s1201_s20  ;;  %s251_s11 = sand.u32 1, %s1765_s24  }
  0x56   : > { %s262_s16 = sshll.u32 %s255_s30, 4  ;;  %s1249_s12 = sshll.u32 %s1765_s24, 11  ;;  %s1954_s16 = int_to_ptr.vmem [resolvable:$true] %s262_s16 }
  0x57   : > { %s1960_s7 = scalar_lea.hbm %s2209_s1, %s1249_s12  ;;  %s1962_s0 = scalar_lea.sflag [#allocation6], %s251_s11 }
  0x58   : > { %s1629_s2 = scalar_lea.hbm %s1960_s7, 2048  ;;  %s1634_s18 = scalar_lea.hbm %s2209_s1, 4096 }
  0x59   : > { %p1630_p5 = scmp.ne.s32.totalorder %s1960_s7, %s1629_s2  ;;  %p1635_p6 = scmp.lt.u32.totalorder %s1960_s7, %s2209_s1 }
  0x5a   : > { %p1636_p8 = scmp.lt.u32.totalorder %s1634_s18, %s1629_s2  ;;  %p1638_p13 = scmp.lt.u32.totalorder %s1629_s2, %s1960_s7 }
  0x5b   : > { %p1632_p1 = pnand %p1630_p5, %p1601_p0 }
  0x5c   : > { %p1637_p10 = por %p1636_p8, %p1635_p6 }
  0x5d   : > { %p1633_p4 = pneg %p1632_p1 }
  0x5e   : > { %p1639_p3 = por %p1638_p13, %p1637_p10 }
  0x60   : > { %p1640_p7 = pnand %p1639_p3, %p1633_p4 }
  0x62   : > { %1643 = shalt.err (!%p1640_p7)
}
  0x63   : > { %s1644_s30 = scalar_lea.vmem %s1954_s16, 2048  ;;  %s1771_s11 = smov [#allocation5]  }
  0x64   : > { %p1645_p9 = scmp.ne.s32.totalorder %s1954_s16, %s1644_s30  ;;  %s1649_s12 = sshll.u32 %s1771_s11, 4  ;;  %s1650_s12 = int_to_ptr.vmem [resolvable:$false] %s1649_s12 }
  0x65   : > { %s1651_s10 = scalar_lea.vmem %s1650_s12, 4096  ;;  %p1652_p1 = scmp.lt.s32.totalorder %s1954_s16, %s1650_s12 }
  0x66   : > { %p1647_p2 = pnand %p1645_p9, %p1601_p0  ;;  %p1653_p6 = scmp.lt.s32.totalorder %s1651_s10, %s1644_s30 }
  0x68   : > { %p1648_p5 = pneg %p1647_p2  ;;  %p1654_p8 = por %p1653_p6, %p1652_p1 }
  0x6a   : > { %p1655_p10 = pnand %p1654_p8, %p1648_p5 }
  0x6c   : > { %1658 = shalt.err (!%p1655_p10)
}
  0x6d   : > { %s1772_s2 = smov 128   ;;  %s1773_s8 = smov 8  }
  0x6e   : > { %1484 = dma.hbm_to_vmem [thread:$0]  (!%p1918_p11), %s1960_s7, 2048, %s1954_s16, %s1962_s0, %s1772_s2, %s1772_s2, %s1773_s8  }
  0x6f   : > { %p2229_p0 = scmp.ne.s32.totalorder %s2222_s29, 0 }
  0x70   : > { %s1991_s15 = sand.u32 (!%p2229_p0), 1, %s1757_s22   ;;  %p2230_p4 = scmp.ne.s32.totalorder (!%p2229_p0), %s2220_s27, 0 }
  0x71   : > { %274 = sbr.rel (%p2229_p0) target bundleno = 1417 (0x589), region = 40  ;;  %s1994_s17 = sshll.u32 (!%p2229_p0), %s1991_s15, 3 }
  0x72   : > { %s277_s18 = scalar_lea.sflag (!%p2229_p0), [#allocation3], %s1991_s15  ;;  %s280_s20 = scalar_lea.vmem (!%p2229_p0), [#allocation2], %s1994_s17 }
  0x78   : > { %1732 = dma.done.wait (%p2230_p4), %s277_s18, 128  }
  0x79   : > { %1734 = vsyncadd (%p2230_p4), %s277_s18, 4294967168  ;;  %s285_s0 = sand.u32 1, %s1834_s25   ;;  %s1206_s29 = sshll.u32 %s1991_s15, 7 }
  0x7a   : > { %s286_s19 = scalar_lea.sflag [#allocation6], %s285_s0  ;;  %s2004_s16 = scalar_lea.vmem [#allocation5], %s1206_s29 }
  0x7b   : > { %1736 = dma.done.wait (%p2230_p4), %s286_s19, 2048  }
  0x7c   : > { %1738 = vsyncadd (%p2230_p4), %s286_s19, 4294965248  ;;  %p2231_p11 = scmp.eq.s32.totalorder %s1834_s25, 0 }
  0x7e   : > { %1740 = dma.done.wait (%p2231_p11), [#allocation6], 4096   ;;  %p2232_p13 = pmov %p2231_p11 }
  0x7f   : > { %v1774_v0 = vmov 0.0   ;;  %vm1775_vm0 = vmmov 0   ;;  %v1535_v1 = vld [vmem:[#allocation7 + $0x40] sm:$0xff]   ;;  %v1536_v2 = vld [vmem:[#allocation7 + $0x48] sm:$0xff]   ;;  %v1537_v3 = vld [vmem:[#allocation7 + $0x50] sm:$0xff]   ;;  %v376_v43 = vlaneseq  ;;  %s331_s11 = scalar_lea.vmem [#allocation9], %s1994_s17 }
  0x80   : > { %1742 = vsyncadd (%p2232_p13), [#allocation6], 4294963200  ;;  %1318 = vmatprep.subr.bf16.mxu0 %v1774_v0  ;;  %1334 = vmatprep.mubr.msk.bf16.mxu0 %vm1775_vm0, %v1774_v0  ;;  %v1538_v4 = vld [vmem:[#allocation7 + $0x58] sm:$0xff]   ;;  %v334_v5 = vld [vmem:[%s2004_s16] sm:$0xff]  ;;  %s1245_s12 = sshll.u32 %s1834_s25, 7  ;;  %s1061_s18 = sshll.u32 %s331_s11, 4  ;;  %s1062_s18 = int_to_ptr.vmem [resolvable:$true] %s1061_s18 }
  0x81   : > { %1338 = vmatprep.subr.bf16.mxu1 %v1535_v1  ;;  %v335_v6 = vld [vmem:[%s2004_s16 + $0x8] sm:$0xff]  ;;  %v1539_v8 = vld [vmem:[#allocation7 + $0x60] sm:$0xff]   ;;  %v1545_v12 = vld [vmem:[#allocation7 + $0x10] sm:$0xff]   ;;  %v2074_v44 = vshrl.u32 %v376_v43, 7  ;;  %s2133_s8 = scalar_lea.hbm %s2214_s6, %s1245_s12  ;;  %s1659_s0 = scalar_lea.vmem %s1062_s18, 128 }
  0x82   : > { %1339 = vmatpush3.bf16.msra.mxu1 %v1535_v1  ;;  %v2019_v7 = vpack.c.bf16 %v335_v6, %v334_v5  ;;  %v1543_v9 = vld [vmem:[#allocation7] sm:$0xff]   ;;  %v1544_v10 = vld [vmem:[#allocation7 + $0x8] sm:$0xff]   ;;  %v1541_v13 = vld [vmem:[#allocation7 + $0x70] sm:$0xff]   ;;  %p1660_p3 = scmp.ne.s32.totalorder %s1062_s18, %s1659_s0  ;;  %s1776_s29 = smov [#allocation9]  }
  0x83   : > { %1340 = vmatprep.subr.bf16.mxu1 %v1536_v2  ;;  %1319 = vmatpush3.bf16.msra.mxu0 %v1543_v9  ;;  %v1540_v11 = vld [vmem:[#allocation7 + $0x68] sm:$0xff]   ;;  %v1546_v14 = vld [vmem:[#allocation7 + $0x18] sm:$0xff]   ;;  %v1547_v16 = vld [vmem:[#allocation7 + $0x20] sm:$0xff]   ;;  %v487_v45 = vsub.s32 1, %v2074_v44  ;;  %s1663_s19 = sshll.u32 %s1776_s29, 4  ;;  %s1664_s19 = int_to_ptr.vmem [resolvable:$false] %s1663_s19 }
  0x84   : > { %1354 = vmatprep.mubr.bf16.mxu1 %v2019_v7  ;;  %1320 = vmatprep.subr.bf16.mxu0 %v1774_v0  ;;  %v1542_v15 = vld [vmem:[#allocation7 + $0x78] sm:$0xff]   ;;  %v336_v17 = vld [vmem:[%s2004_s16 + $0x10] sm:$0xff]  ;;  %v338_v19 = vld [vmem:[%s2004_s16 + $0x20] sm:$0xff]  ;;  %p1661_p7 = pnand %p1660_p3, %p1904_p12  ;;  %p1666_p2 = scmp.lt.s32.totalorder %s1062_s18, %s1664_s19 }
  0x85   : > { %v337_v18 = vld [vmem:[%s2004_s16 + $0x18] sm:$0xff]  ;;  %v339_v20 = vld [vmem:[%s2004_s16 + $0x28] sm:$0xff]  ;;  %v1549_v24 = vld [vmem:[#allocation7 + $0x30] sm:$0xff]  }
  0x86   : > { %1341 = vmatpush3.bf16.msra.mxu1 %v1536_v2  ;;  %v1548_v21 = vld [vmem:[#allocation7 + $0x28] sm:$0xff]   ;;  %v2030_v22 = vpack.c.bf16 %v337_v18, %v336_v17  ;;  %v2032_v23 = vpack.c.bf16 %v339_v20, %v338_v19  ;;  %v340_v25 = vld [vmem:[%s2004_s16 + $0x30] sm:$0xff]  ;;  %v341_v26 = vld [vmem:[%s2004_s16 + $0x38] sm:$0xff]  ;;  %p1662_p9 = pneg %p1661_p7 }
  0x87   : > { %1342 = vmatprep.subr.bf16.mxu1 %v1537_v3  ;;  %1321 = vmatpush3.bf16.msra.mxu0 %v1544_v10  ;;  %v342_v27 = vld [vmem:[%s2004_s16 + $0x40] sm:$0xff]  ;;  %v343_v28 = vld [vmem:[%s2004_s16 + $0x48] sm:$0xff]  ;;  %v2043_v29 = vpack.c.bf16 %v341_v26, %v340_v25  ;;  %v1550_v30 = vld [vmem:[#allocation7 + $0x38] sm:$0xff]  }
  0x88   : > { %1322 = vmatprep.subr.bf16.mxu0 %v1774_v0  ;;  %v2047_v31 = vld [vmem:[%s280_s20] sm:$0xff]  ;;  %v2049_v32 = vpack.c.bf16 %v343_v28, %v342_v27  ;;  %v346_v36 = vld [vmem:[%s2004_s16 + $0x60] sm:$0xff]  ;;  %v347_v37 = vld [vmem:[%s2004_s16 + $0x68] sm:$0xff]  ;;  %s1035_s20 = scalar_lea.sflag [#allocation10], %s1991_s15 }
  0x89   : > { %v350_v33 = vpack.c.bf16 %v2047_v31, %v2047_v31  ;;  %v344_v34 = vld [vmem:[%s2004_s16 + $0x50] sm:$0xff]  ;;  %v345_v35 = vld [vmem:[%s2004_s16 + $0x58] sm:$0xff]  ;;  %v2063_v39 = vpack.c.bf16 %v347_v37, %v346_v36 }
  0x8a   : > { %1343 = vmatpush3.bf16.msra.mxu1 %v1537_v3  ;;  %v2060_v38 = vpack.c.bf16 %v345_v35, %v344_v34  ;;  %v348_v40 = vld [vmem:[%s2004_s16 + $0x70] sm:$0xff]  ;;  %v349_v41 = vld [vmem:[%s2004_s16 + $0x78] sm:$0xff]  ;;  %v378_v34 = vsub.s32 0, %v2074_v44  ;;  %s1665_s16 = scalar_lea.vmem %s1664_s19, 256 }
  0x8b   : > { %1344 = vmatprep.subr.bf16.mxu1 %v1538_v4  ;;  %1323 = vmatpush3.bf16.msra.mxu0 %v1545_v12  ;;  %v2069_v42 = vpack.c.bf16 %v349_v41, %v348_v40  ;;  %v2080_v46 = vld [vmem:[%s2211_s3] sm:$0xf]  ;;  %v1551_v40 = vld [vmem:[#allocation7 + $0x80] sm:$0xff]   ;;  %v1552_v41 = vld [vmem:[#allocation7 + $0x88] sm:$0xff]   ;;  %p1667_p5 = scmp.lt.s32.totalorder %s1665_s16, %s1659_s0 }
  0x8c   : > { %1324 = vmatprep.subr.bf16.mxu0 %v1774_v0  ;;  %v488_v47 = vrot.slane %v2080_v46, %v487_v45  ;;  %v379_v35 = vrot.slane %v2080_v46, %v378_v34  ;;  %v1553_v43 = vld [vmem:[#allocation7 + $0x90] sm:$0xff]   ;;  %v1554_v45 = vld [vmem:[#allocation7 + $0x98] sm:$0xff]  }
  0x8d   : > { %p1668_p1 = por %p1667_p5, %p1666_p2 }
  0x8e   : > { %1345 = vmatpush3.bf16.msra.mxu1 %v1538_v4 }
  0x8f   : > { %1346 = vmatprep.subr.bf16.mxu1 %v1539_v8  ;;  %1325 = vmatpush3.bf16.msra.mxu0 %v1546_v14  ;;  %p1669_p6 = pnand %p1668_p1, %p1662_p9 }
  0x90   : > { %1326 = vmatprep.subr.bf16.mxu0 %v1774_v0 }
  0x92   : > { %1347 = vmatpush3.bf16.msra.mxu1 %v1539_v8 }
  0x93   : > { %1348 = vmatprep.subr.bf16.mxu1 %v1540_v11  ;;  %1327 = vmatpush3.bf16.msra.mxu0 %v1547_v16 }
  0x94   : > { %1328 = vmatprep.subr.bf16.mxu0 %v1774_v0 }
  0x96   : > { %1349 = vmatpush3.bf16.msra.mxu1 %v1540_v11 }
  0x97   : > { %1350 = vmatprep.subr.bf16.mxu1 %v1541_v13  ;;  %1329 = vmatpush3.bf16.msra.mxu0 %v1548_v21 }
  0x98   : > { %1330 = vmatprep.subr.bf16.mxu0 %v1774_v0 }
  0x9a   : > { %1351 = vmatpush3.bf16.msra.mxu1 %v1541_v13 }
  0x9b   : > { %1352 = vmatprep.subr.bf16.mxu1 %v1542_v15  ;;  %1331 = vmatpush3.bf16.msra.mxu0 %v1549_v24 }
  0x9c   : > { %1332 = vmatprep.subr.bf16.mxu0 %v1774_v0 }
  0x9e   : > { %1353 = vmatpush3.bf16.msra.mxu1 %v1542_v15 }
  0x9f   : > { %1402 = vmatprep.subr.bf16.mxu1 %v1774_v0  ;;  %1333 = vmatpush3.bf16.msra.mxu0 %v1550_v30 }
  0xa0   : > { %1370 = vmatprep.subr.bf16.mxu0 %v1551_v40 }
  0xa1   : > { %1355 = vmatmul.mubr.bf16.vlgmr.msra.gmra.mrb[0].mxu1 %v2030_v22 }
  0xa2   : > { %1358 = vmatprep.mubr.bf16.mxu1 %v2032_v23  ;;  %1335 = vmatmul.mubr.bf16.vlgmr.msra.gmra.mrb[0].mxu0 %v350_v33 }
  0xa3   : > { %1386 = vmatprep.mubr.bf16.mxu0 %v2019_v7  ;;  %1371 = vmatpush3.bf16.msra.mxu0 %v1551_v40 }
  0xa4   : > { %1372 = vmatprep.subr.bf16.mxu0 %v1552_v41 }
  0xa7   : > { %1373 = vmatpush3.bf16.msra.mxu0 %v1552_v41 }
  0xa8   : > { %1374 = vmatprep.subr.bf16.mxu0 %v1553_v43 }
  0xa9   : > { %1359 = vmatmul.mubr.bf16.gmra.mrb[4].mxu1 %v2043_v29 }
  0xaa   : > { %1362 = vmatprep.mubr.bf16.mxu1 %v2049_v32 }
  0xab   : > { %1375 = vmatpush3.bf16.msra.mxu0 %v1553_v43 }
  0xac   : > { %1376 = vmatprep.subr.bf16.mxu0 %v1554_v45 }
  0xaf   : > { %1377 = vmatpush3.bf16.msra.mxu0 %v1554_v45  ;;  %v1559_v45 = vld [vmem:[#allocation7 + $0xc0] sm:$0xff]  }
  0xb1   : > { %1363 = vmatmul.mubr.bf16.gmra.mrb[8].mxu1 %v2060_v38 }
  0xb2   : > { %1366 = vmatprep.mubr.bf16.mxu1 %v2063_v39 }
  0xb9   : > { %1367 = vmatmul.mubr.bf16.gmra.mrb[12].mxu1 %v2069_v42 }
  0xba   : > { %1418 = vmatprep.mubr.msk.bf16.mxu1 %vm1775_vm0, %v1774_v0 }
 0x174   : > { %v1356_v48 = vpop.f32.mrb[0].mxu1 }
 0x175   : > { %v571_v49 = vpop.f32.mrb[1].mxu1  ;;  %v580_v51 = vadd.f32 %v1356_v48, %v488_v47  ;;  %v462_v2 = vpop.f32.mrb[0].mxu0  ;;  %v1556_v48 = vld [vmem:[#allocation7 + $0xa8] sm:$0xff]  }
 0x176   : > { %v1357_v50 = vpop.f32.mrb[2].mxu1  ;;  %v572_v54 = vadd.f32 %v571_v49, %v488_v47  ;;  %v1336_v4 = vpop.f32.mrb[1].mxu0  ;;  %v463_v36 = vadd.f32 %v462_v2, %v379_v35  ;;  %v1557_v49 = vld [vmem:[#allocation7 + $0xb0] sm:$0xff]  }
 0x177   : > { %v583_v52 = vadd.f32 %v1357_v50, %v488_v47  ;;  %v574_v53 = vpop.f32.mrb[3].mxu1  ;;  %v465_v6 = vpop.f32.mrb[2].mxu0  ;;  %v1558_v50 = vld [vmem:[#allocation7 + $0xb8] sm:$0xff]  }
 0x178   : > { %v575_v55 = vadd.f32 %v574_v53, %v488_v47  ;;  %v1337_v8 = vpop.f32.mrb[3].mxu0  ;;  %v800_v37 = vpack.c.bf16 %v463_v36, %v463_v36 }
 0x179   : > { %v802_v56 = vpack.c.bf16 %v583_v52, %v580_v51  ;;  %v1234_v51 = vld [vmem:[%s2212_s4] ss:$0 sm:$0xff] }
 0x17a   : > { %v801_v57 = vpack.c.bf16 %v575_v55, %v572_v54 }
 0x17c   : > { %1403 = vmatpush3.bf16.xpose.msra.mxu1 %v801_v57  ;;  %v1360_v58 = vpop.f32.mrb[4].mxu1 }
 0x17d   : > { %v596_v59 = vadd.f32 %v1360_v58, %v488_v47  ;;  %v587_v60 = vpop.f32.mrb[5].mxu1  ;;  %1404 = vmatprep.subr.bf16.mxu1 %v1774_v0 }
 0x17e   : > { %v588_v61 = vadd.f32 %v587_v60, %v488_v47  ;;  %v1361_v62 = vpop.f32.mrb[6].mxu1 }
 0x17f   : > { %v599_v63 = vadd.f32 %v1361_v62, %v488_v47  ;;  %v590_v1 = vpop.f32.mrb[7].mxu1 }
 0x180   : > { %v591_v3 = vadd.f32 %v590_v1, %v488_v47 }
 0x181   : > { %v804_v5 = vpack.c.bf16 %v599_v63, %v596_v59 }
 0x182   : > { %v803_v7 = vpack.c.bf16 %v591_v3, %v588_v61 }
 0x184   : > { %1405 = vmatpush3.bf16.xpose.msra.mxu1 %v802_v56  ;;  %v1364_v9 = vpop.f32.mrb[8].mxu1 }
 0x185   : > { %1406 = vmatprep.subr.bf16.mxu1 %v1774_v0  ;;  %v612_v10 = vadd.f32 %v1364_v9, %v488_v47  ;;  %v603_v11 = vpop.f32.mrb[9].mxu1 }
 0x186   : > { %v604_v12 = vadd.f32 %v603_v11, %v488_v47  ;;  %v1365_v13 = vpop.f32.mrb[10].mxu1 }
 0x187   : > { %v615_v14 = vadd.f32 %v1365_v13, %v488_v47  ;;  %v606_v15 = vpop.f32.mrb[11].mxu1 }
 0x188   : > { %v607_v16 = vadd.f32 %v606_v15, %v488_v47 }
 0x189   : > { %v806_v17 = vpack.c.bf16 %v615_v14, %v612_v10 }
 0x18a   : > { %v805_v18 = vpack.c.bf16 %v607_v16, %v604_v12 }
 0x18c   : > { %1407 = vmatpush3.bf16.xpose.msra.mxu1 %v803_v7  ;;  %v1368_v19 = vpop.f32.mrb[12].mxu1 }
 0x18d   : > { %1408 = vmatprep.subr.bf16.mxu1 %v1774_v0  ;;  %v628_v20 = vadd.f32 %v1368_v19, %v488_v47  ;;  %v619_v21 = vpop.f32.mrb[13].mxu1 }
 0x18e   : > { %v620_v24 = vadd.f32 %v619_v21, %v488_v47  ;;  %v1369_v25 = vpop.f32.mrb[14].mxu1 }
 0x18f   : > { %v631_v26 = vadd.f32 %v1369_v25, %v488_v47  ;;  %v622_v27 = vpop.f32.mrb[15].mxu1 }
 0x190   : > { %v623_v28 = vadd.f32 %v622_v27, %v488_v47  ;;  %v1555_v47 = vld [vmem:[#allocation7 + $0xa0] sm:$0xff]  }
 0x191   : > { %v808_v30 = vpack.c.bf16 %v631_v26, %v628_v20  ;;  %1378 = vmatprep.subr.bf16.mxu0 %v1555_v47 }
 0x192   : > { %v807_v33 = vpack.c.bf16 %v623_v28, %v620_v24  ;;  %1379 = vmatpush3.bf16.msra.mxu0 %v1555_v47 }
 0x193   : > { %1380 = vmatprep.subr.bf16.mxu0 %v1556_v48 }
 0x194   : > { %1409 = vmatpush3.bf16.xpose.msra.mxu1 %v804_v5 }
 0x195   : > { %1410 = vmatprep.subr.bf16.mxu1 %v1774_v0 }
 0x196   : > { %1381 = vmatpush3.bf16.msra.mxu0 %v1556_v48  ;;  %v1560_v48 = vld [vmem:[#allocation7 + $0xc8] sm:$0xff]  }
 0x197   : > { %1382 = vmatprep.subr.bf16.mxu0 %v1557_v49 }
 0x19a   : > { %1383 = vmatpush3.bf16.msra.mxu0 %v1557_v49  ;;  %v1561_v49 = vld [vmem:[#allocation7 + $0xd0] sm:$0xff]  }
 0x19b   : > { %1384 = vmatprep.subr.bf16.mxu0 %v1558_v50 }
 0x19c   : > { %1411 = vmatpush3.bf16.xpose.msra.mxu1 %v805_v18 }
 0x19d   : > { %1412 = vmatprep.subr.bf16.mxu1 %v1774_v0 }
 0x19e   : > { %1385 = vmatpush3.bf16.msra.mxu0 %v1558_v50  ;;  %v1562_v50 = vld [vmem:[#allocation7 + $0xd8] sm:$0xff]  }
 0x19f   : > { %1422 = vmatprep.subr.bf16.mxu0 %v1774_v0 }
 0x1a1   : > { %1387 = vmatmul.mubr.bf16.vlgmr.msra.gmra.mrb[4].mxu0 %v2030_v22 }
 0x1a2   : > { %1390 = vmatprep.mubr.bf16.mxu0 %v2032_v23 }
 0x1a4   : > { %1413 = vmatpush3.bf16.xpose.msra.mxu1 %v806_v17 }
 0x1a5   : > { %1414 = vmatprep.subr.bf16.mxu1 %v1774_v0 }
 0x1a9   : > { %1391 = vmatmul.mubr.bf16.gmra.mrb[8].mxu0 %v2043_v29 }
 0x1aa   : > { %1394 = vmatprep.mubr.bf16.mxu0 %v2049_v32  ;;  %v653_v32 = vsub.s32 2, %v2074_v44 }
 0x1ac   : > { %1415 = vmatpush3.bf16.xpose.msra.mxu1 %v807_v33 }
 0x1ad   : > { %1416 = vmatprep.subr.bf16.mxu1 %v1774_v0 }
 0x1b1   : > { %1395 = vmatmul.mubr.bf16.gmra.mrb[12].mxu0 %v2060_v38  ;;  %v654_v38 = vrot.slane %v2080_v46, %v653_v32 }
 0x1b2   : > { %1398 = vmatprep.mubr.bf16.mxu0 %v2063_v39 }
 0x1b4   : > { %1417 = vmatpush3.bf16.xpose.msra.mxu1 %v808_v30 }
 0x1b9   : > { %1399 = vmatmul.mubr.bf16.gmra.mrb[16].mxu0 %v2069_v42 }
 0x1ba   : > { %1438 = vmatprep.mubr.msk.bf16.mxu0 %vm1775_vm0, %v1774_v0 }
 0x1bb   : > { %1419 = vmatmul.mubr.bf16.vlgmr.msra.gmra.mrb[16].mxu1 %v800_v37 }
 0x274   : > { %v1388_v39 = vpop.f32.mrb[4].mxu0 }
 0x275   : > { %v746_v54 = vadd.f32 %v1388_v39, %v654_v38  ;;  %v737_v42 = vpop.f32.mrb[5].mxu0 }
 0x276   : > { %v738_v55 = vadd.f32 %v737_v42, %v654_v38  ;;  %v1389_v56 = vpop.f32.mrb[6].mxu0 }
 0x277   : > { %v749_v57 = vadd.f32 %v1389_v56, %v654_v38  ;;  %v740_v58 = vpop.f32.mrb[7].mxu0 }
 0x278   : > { %v741_v59 = vadd.f32 %v740_v58, %v654_v38 }
 0x279   : > { %v810_v60 = vpack.c.bf16 %v749_v57, %v746_v54 }
 0x27a   : > { %v809_v61 = vpack.c.bf16 %v741_v59, %v738_v55 }
 0x27c   : > { %v1392_v62 = vpop.f32.mrb[8].mxu0  ;;  %1423 = vmatpush3.bf16.msra.mxu0 %v809_v61 }
 0x27d   : > { %v762_v63 = vadd.f32 %v1392_v62, %v654_v38  ;;  %v753_v1 = vpop.f32.mrb[9].mxu0  ;;  %1424 = vmatprep.subr.bf16.mxu0 %v1774_v0 }
 0x27e   : > { %v754_v2 = vadd.f32 %v753_v1, %v654_v38  ;;  %v1393_v3 = vpop.f32.mrb[10].mxu0 }
 0x27f   : > { %v765_v4 = vadd.f32 %v1393_v3, %v654_v38  ;;  %v756_v5 = vpop.f32.mrb[11].mxu0 }
 0x280   : > { %v757_v6 = vadd.f32 %v756_v5, %v654_v38  ;;  %1425 = vmatpush3.bf16.msra.mxu0 %v810_v60 }
 0x281   : > { %v812_v7 = vpack.c.bf16 %v765_v4, %v762_v63  ;;  %1426 = vmatprep.subr.bf16.mxu0 %v1774_v0 }
 0x282   : > { %v811_v8 = vpack.c.bf16 %v757_v6, %v754_v2 }
 0x284   : > { %v1396_v9 = vpop.f32.mrb[12].mxu0  ;;  %1427 = vmatpush3.bf16.msra.mxu0 %v811_v8 }
 0x285   : > { %v778_v10 = vadd.f32 %v1396_v9, %v654_v38  ;;  %v769_v11 = vpop.f32.mrb[13].mxu0  ;;  %1428 = vmatprep.subr.bf16.mxu0 %v1774_v0 }
 0x286   : > { %v770_v12 = vadd.f32 %v769_v11, %v654_v38  ;;  %v1397_v13 = vpop.f32.mrb[14].mxu0 }
 0x287   : > { %v781_v14 = vadd.f32 %v1397_v13, %v654_v38  ;;  %v772_v15 = vpop.f32.mrb[15].mxu0 }
 0x288   : > { %v773_v16 = vadd.f32 %v772_v15, %v654_v38  ;;  %1429 = vmatpush3.bf16.msra.mxu0 %v812_v7 }
 0x289   : > { %v814_v17 = vpack.c.bf16 %v781_v14, %v778_v10  ;;  %1430 = vmatprep.subr.bf16.mxu0 %v1774_v0 }
 0x28a   : > { %v813_v18 = vpack.c.bf16 %v773_v16, %v770_v12 }
 0x28c   : > { %v1400_v20 = vpop.f32.mrb[16].mxu0  ;;  %1431 = vmatpush3.bf16.msra.mxu0 %v813_v18 }
 0x28d   : > { %v794_v24 = vadd.f32 %v1400_v20, %v654_v38  ;;  %v785_v25 = vpop.f32.mrb[17].mxu0  ;;  %1432 = vmatprep.subr.bf16.mxu0 %v1774_v0 }
 0x28e   : > { %v858_v22 = vpop.f32.mrb[16].mxu1  ;;  %v786_v26 = vadd.f32 %v785_v25, %v654_v38  ;;  %v1401_v27 = vpop.f32.mrb[18].mxu0 }
 0x28f   : > { %v859_v52 = vadd.f32 %v1234_v51, %v858_v22  ;;  %v1420_v23 = vpop.f32.mrb[17].mxu1  ;;  %v797_v30 = vadd.f32 %v1401_v27, %v654_v38  ;;  %v788_v33 = vpop.f32.mrb[19].mxu0  ;;  %v1563_v51 = vld [vmem:[#allocation7 + $0xe0] sm:$0xff]   ;;  %v1564_v22 = vld [vmem:[#allocation7 + $0xe8] sm:$0xff]  }
 0x290   : > { %v861_v53 = vpop.f32.mrb[18].mxu1  ;;  %v789_v34 = vadd.f32 %v788_v33, %v654_v38  ;;  %1433 = vmatpush3.bf16.msra.mxu0 %v814_v17  ;;  %v1566_v23 = vld [vmem:[#allocation7 + $0xf8] sm:$0xff]  }
 0x291   : > { %864 = vmax.xlane.f32.xlu0 %v859_v52  ;;  %v1421_v29 = vpop.f32.mrb[19].mxu1  ;;  %v816_v35 = vpack.c.bf16 %v797_v30, %v794_v24  ;;  %1434 = vmatprep.subr.bf16.mxu0 %v1774_v0 }
 0x292   : > { %v815_v36 = vpack.c.bf16 %v789_v34, %v786_v26 }
 0x294   : > { %1435 = vmatpush3.bf16.msra.mxu0 %v815_v36 }
 0x295   : > { %1436 = vmatprep.subr.bf16.mxu0 %v1774_v0 }
 0x298   : > { %1437 = vmatpush3.bf16.msra.mxu0 %v816_v35 }
 0x299   : > { %1442 = vmatprep.subr.bf16.mxu0 %v1774_v0 }
 0x31e   : > { %v865_v19 = vpop.xlane.xlu0 %864 }
 0x31f   : > { %v866_v21 = vsub.f32 %v859_v52, %v865_v19  ;;  %v1565_v52 = vld [vmem:[#allocation7 + $0xf0] sm:$0xff]  }
 0x321   : > { %v867_v28 = vmul.f32 1.442695, %v866_v21 }
 0x323   : > { %1567 = vpow2.f32 %v867_v28 }
 0x32d   : > { %v1568_v37 = vpop.eup %1567 }
 0x32e   : > { %869 = vadd.xlane.f32.xlu0 %v1568_v37 }
 0x3bb   : > { %v870_v40 = vpop.xlane.xlu0 %869 }
 0x3bc   : > { %1569 = vrcp.f32 %v870_v40 }
 0x3c6   : > { %v1570_v41 = vpop.eup %1569 }
 0x3c7   : > { %v872_v43 = vmul.f32 %v1570_v41, %v1568_v37 }
 0x3c9   : > { %v873_v47 = vpack.c.bf16 %v872_v43, %v872_v43  ;;  %1028 = vst [vmem:[%s331_s11] sm:$0xff] %v872_v43 }
 0x3cb   : > { %1439 = vmatmul.mubr.bf16.vlgmr.msra.gmra.mrb[20].mxu0 %v873_v47 }
 0x3cc   : > { %1443 = vmatpush3.bf16.msra.mxu0 %v1559_v45  ;;  %1458 = vmatprep.mubr.msk.bf16.mxu0 %vm1775_vm0, %v1774_v0 }
 0x3cd   : > { %1444 = vmatprep.subr.bf16.mxu0 %v1774_v0 }
 0x3d0   : > { %1445 = vmatpush3.bf16.msra.mxu0 %v1560_v48 }
 0x3d1   : > { %1446 = vmatprep.subr.bf16.mxu0 %v1774_v0 }
 0x3d4   : > { %1447 = vmatpush3.bf16.msra.mxu0 %v1561_v49 }
 0x3d5   : > { %1448 = vmatprep.subr.bf16.mxu0 %v1774_v0 }
 0x3d8   : > { %1449 = vmatpush3.bf16.msra.mxu0 %v1562_v50 }
 0x3d9   : > { %1450 = vmatprep.subr.bf16.mxu0 %v1774_v0 }
 0x3dc   : > { %1451 = vmatpush3.bf16.msra.mxu0 %v1563_v51 }
 0x3dd   : > { %1452 = vmatprep.subr.bf16.mxu0 %v1774_v0 }
 0x3e0   : > { %1453 = vmatpush3.bf16.msra.mxu0 %v1564_v22 }
 0x3e1   : > { %1454 = vmatprep.subr.bf16.mxu0 %v1774_v0 }
 0x3e4   : > { %1455 = vmatpush3.bf16.msra.mxu0 %v1565_v52 }
 0x3e5   : > { %1456 = vmatprep.subr.bf16.mxu0 %v1774_v0 }
 0x3e8   : > { %1457 = vmatpush3.bf16.msra.mxu0 %v1566_v23 }
 0x49e   : > { %v908_v53 = vpop.f32.mrb[20].mxu0 }
 0x49f   : > { %v914_v29 = vpack.c.bf16 %v908_v53, %v908_v53  ;;  %v1440_v32 = vpop.f32.mrb[21].mxu0 }
 0x4a0   : > { %v911_v38 = vpop.f32.mrb[22].mxu0 }
 0x4a1   : > { %v1441_v39 = vpop.f32.mrb[23].mxu0  ;;  %1459 = vmatmul.mubr.bf16.vlgmr.msra.gmra.mrb[24].mxu0 %v914_v29 }
 0x4a2   : > { %1672 = shalt.err (!%p1669_p6)
}
 0x4a3   : > { %s1673_s27 = scalar_lea.hbm %s2133_s8, 128  ;;  %s1677_s30 = scalar_lea.hbm %s2214_s6, 256 }
 0x4a4   : > { %p1674_p8 = scmp.ne.s32.totalorder %s2133_s8, %s1673_s27  ;;  %p1678_p4 = scmp.lt.u32.totalorder %s2133_s8, %s2214_s6 }
 0x4a5   : > { %p1679_p11 = scmp.lt.u32.totalorder %s1677_s30, %s1673_s27  ;;  %p1681_p3 = scmp.lt.u32.totalorder %s1673_s27, %s2133_s8 }
 0x4a6   : > { %p1675_p10 = pnand %p1674_p8, %p1904_p12 }
 0x4a7   : > { %p1680_p13 = por %p1679_p11, %p1678_p4 }
 0x4a8   : > { %p1676_p0 = pneg %p1675_p10 }
 0x4a9   : > { %p1682_p7 = por %p1681_p3, %p1680_p13 }
 0x4ab   : > { %p1683_p9 = pnand %p1682_p7, %p1676_p0 }
 0x4ad   : > { %1686 = shalt.err (!%p1683_p9)
}
 0x4ae   : > { %1471 = dma.vmem_to_hbm [thread:$0]  (%p1904_p12), %s1062_s18, 128, %s2133_s8, %s1035_s20   ;;  %v934_v0 = vsub.s32 3, %v2074_v44  ;;  %v1024_v56 = vmul.f32 0.1, %v2047_v31 }
 0x4af   : > { %s324_s2 = scalar_lea.vmem [#allocation8], %s1994_s17  ;;  %s2164_s18 = scalar_lea.hbm %s2213_s5, %s1245_s12 }
 0x4b0   : > { %v935_v54 = vrot.slane %v2080_v46, %v934_v0  ;;  %s1048_s0 = sshll.u32 %s324_s2, 4  ;;  %s1030_s20 = scalar_lea.sflag [#allocation4], %s1991_s15  ;;  %s2166_s0 = int_to_ptr.vmem [resolvable:$true] %s1048_s0 }
 0x4b1   : > { %s1687_s19 = scalar_lea.vmem %s2166_s0, 128  ;;  %s1777_s17 = smov [#allocation8]  }
 0x4b2   : > { %p1688_p2 = scmp.ne.s32.totalorder %s2166_s0, %s1687_s19  ;;  %s1691_s16 = sshll.u32 %s1777_s17, 4  ;;  %s1692_s16 = int_to_ptr.vmem [resolvable:$false] %s1691_s16 }
 0x4b3   : > { %s1693_s25 = scalar_lea.vmem %s1692_s16, 256  ;;  %p1694_p6 = scmp.lt.s32.totalorder %s2166_s0, %s1692_s16 }
 0x4b4   : > { %p1689_p5 = pnand %p1688_p2, %p1904_p12  ;;  %p1695_p8 = scmp.lt.s32.totalorder %s1693_s25, %s1687_s19 }
 0x4b6   : > { %p1690_p1 = pneg %p1689_p5  ;;  %p1696_p10 = por %p1695_p8, %p1694_p6 }
 0x4b8   : > { %p1697_p0 = pnand %p1696_p10, %p1690_p1 }
 0x574   : > { %v1018_v42 = vpop.f32.mrb[24].mxu0 }
 0x575   : > { %v1019_v55 = vadd.f32 %v1018_v42, %v935_v54  ;;  %v1460_v57 = vpop.f32.mrb[25].mxu0 }
 0x576   : > { %v1021_v58 = vpop.f32.mrb[26].mxu0 }
 0x577   : > { %v1025_v59 = vmul.f32 0.9, %v1019_v55  ;;  %v1461_v60 = vpop.f32.mrb[27].mxu0 }
 0x579   : > { %v1026_v61 = vadd.f32 %v1025_v59, %v1024_v56 }
 0x57b   : > { %1027 = vst [vmem:[%s324_s2] sm:$0xff] %v1026_v61 }
 0x57c   : > { %1700 = shalt.err (!%p1697_p0)
}
 0x57d   : > { %s1701_s15 = scalar_lea.hbm %s2164_s18, 128  ;;  %s1705_s7 = scalar_lea.hbm %s2213_s5, 256 }
 0x57e   : > { %p1702_p4 = scmp.ne.s32.totalorder %s2164_s18, %s1701_s15  ;;  %p1706_p3 = scmp.lt.u32.totalorder %s2164_s18, %s2213_s5 }
 0x57f   : > { %p1707_p7 = scmp.lt.u32.totalorder %s1705_s7, %s1701_s15  ;;  %p1709_p2 = scmp.lt.u32.totalorder %s1701_s15, %s2164_s18 }
 0x580   : > { %p1703_p11 = pnand %p1702_p4, %p1904_p12 }
 0x581   : > { %p1708_p9 = por %p1707_p7, %p1706_p3 }
 0x582   : > { %p1704_p13 = pneg %p1703_p11 }
 0x583   : > { %p1710_p5 = por %p1709_p2, %p1708_p9 }
 0x585   : > { %p1711_p1 = pnand %p1710_p5, %p1704_p13 }
 0x587   : > { %1714 = shalt.err (!%p1711_p1)
}
 0x588   : > { %1470 = dma.vmem_to_hbm [thread:$0]  (%p1904_p12), %s2166_s0, 128, %s2164_s18, %s1030_s20  }
 0x589 PF: > { %s1073_s11 = sand.u32 1, %s1753_s21   ;;  %p2233_p6 = scmp.ne.s32.totalorder %s2221_s28, 0 }
 0x58a   : > { %p2234_p8 = scmp.ge.s32.totalorder %s1765_s24, 2  ;;  %s1074_s10 = scalar_lea.sflag [#allocation4], %s1073_s11 }
 0x58c   : > { %p1486_p10 = pnand %p2234_p8, %p2233_p6 }
 0x58e   : > { %1744 = dma.done.wait (!%p1486_p10), %s1074_s10, 128  }
 0x58f   : > { %1746 = vsyncadd (!%p1486_p10), %s1074_s10, 4294967168  ;;  %s1083_s2 = scalar_lea.sflag [#allocation10], %s1073_s11 }
 0x590   : > { %1748 = dma.done.wait (!%p1486_p10), %s1083_s2, 128  }
 0x591   : > { %1750 = vsyncadd (!%p1486_p10), %s1083_s2, 4294967168  ;;  %p26_p12 = scmp.ge.s32.totalorder %s1869_s9, 4   ;;  %s2235_s21 = smov %s1757_s22 }
 0x592   : > { %s2236_s22 = smov %s1761_s23  ;;  %s2237_s23 = smov %s1900_s13 }
 0x593   : > { %s2238_s24 = smov %s1869_s9  ;;  %28 = sbr.rel (!%p26_p12) target bundleno = 12 (0xc), region = 122 }
 0x59a   :  { %1088 = vsyncpa [#allocation3], 1 }
 0x59b   :  { %1090 = vsyncpa [#allocation3 + $0x1], 1 }
 0x59c   :  { %1091 = vsyncpa [#allocation6], 1 }
 0x59d   :  { %1093 = vsyncpa [#allocation6 + $0x1], 1 }
 0x59e   :  { %1094 = vsyncpa [#allocation4], 1 }
 0x59f   :  { %1096 = vsyncpa [#allocation4 + $0x1], 1 }
 0x5a0   :  { %1097 = vsyncpa [#allocation10], 1 }
 0x5a1   :  { %1099 = vsyncpa [#allocation10 + $0x1], 1 }

</bundles_post_ra>
